<compile_context>
chip_gen: v7x
topology: tpu7x:2x2x1
jax: 0.10.0
libtpu: 0.0.40
codegen_flags: <defaults>
</compile_context>

<pallas_src>
import functools

import jax
import jax.numpy as jnp
from jax import lax
from jax.experimental import pallas as pl
from jax.experimental.pallas import tpu as pltpu


# --------------------------------------------------------------------------- #
# Kernels
# --------------------------------------------------------------------------- #
def _matmul_kernel(x_ref, a_ref, k_ref):
    """k_xa tile = x_tile @ a_tile.T; whole D fits one block (no k loop).

    The contraction is the last axis of both operands (implicit RHS transpose,
    no data movement), accumulated in f32 on the MXU and cast to the output
    (input) dtype exactly once on store.
    """
    k_ref[...] = lax.dot_general(
        x_ref[...], a_ref[...],
        dimension_numbers=(((1,), (1,)), ((), ())),
        preferred_element_type=jnp.float32,
    ).astype(k_ref.dtype)


def _matmul_acc_kernel(x_ref, a_ref, k_ref, acc_ref):
    """Fallback for very large D: accumulate over the k grid axis in f32."""
    k = pl.program_id(2)

    @pl.when(k == 0)
    def _():
        acc_ref[...] = jnp.zeros_like(acc_ref)

    acc_ref[...] += lax.dot_general(
        x_ref[...], a_ref[...],
        dimension_numbers=(((1,), (1,)), ((), ())),
        preferred_element_type=jnp.float32,
    )

    @pl.when(k == pl.num_programs(2) - 1)
    def _():
        k_ref[...] = acc_ref[...].astype(k_ref.dtype)


# --------------------------------------------------------------------------- #
# Planning helpers (pure Python, run at trace/setup time)
# --------------------------------------------------------------------------- #
_TILE_CANDIDATES = (1024, 512, 256, 128)


def _round_up(x, m):
    return ((x + m - 1) // m) * m


@functools.lru_cache(maxsize=1)
def _vmem_capacity_bytes():
    cap = 64 << 20  # conservative fallback = v7x per-TC VMEM
    try:
        info = pltpu.get_tpu_info()
        cap = int(getattr(info, "vmem_capacity_bytes", cap)) or cap
    except Exception:
        pass
    return cap


def _vmem_limit(ws_bytes, cap):
    return int(min(max(ws_bytes + (8 << 20), 32 << 20), int(cap * 0.9)))


def _plan(N, D, in_itemsize, out_itemsize):
    """Pick (Np, Dp, tm, tn, tk, vmem_limit) from a VMEM-capacity budget."""
    cap = _vmem_capacity_bytes()
    budget = int(cap * 0.6)

    def ws(tm, tn, tk, acc):
        w = 2 * (tm + tn) * tk * in_itemsize + 2 * tm * tn * out_itemsize
        if acc:
            w += tm * tn * 4
        return w

    # (a) whole problem in one block (small N, any divisibility) -- no padding.
    if N <= 1024 and ws(N, N, D, False) <= budget:
        return N, D, N, N, D, _vmem_limit(ws(N, N, D, False), cap)

    Np = _round_up(N, 128)

    # (b) tk == D (collapsed reduction axis): biggest square tile that fits.
    for t in _TILE_CANDIDATES:
        if t > Np or Np % t:
            continue
        if ws(t, t, D, False) <= budget:
            tm = tn = t
            # Keep >= 2 output blocks so both TensorCores share the grid.
            if Np // tm == 1 and Np // tn == 1 and Np % 256 == 0:
                tn = Np // 2
            return Np, D, tm, tn, D, _vmem_limit(ws(tm, tn, D, False), cap)

    # (c) D too large for one k step: pad D, split it, accumulate in f32.
    Dp = _round_up(D, 128)
    for t in _TILE_CANDIDATES:
        if t > Np or Np % t:
            continue
        for tk in (2048, 1024, 512, 256, 128):
            if tk > Dp or Dp % tk:
                continue
            if ws(t, t, tk, True) <= budget:
                return Np, Dp, t, t, tk, _vmem_limit(ws(t, t, tk, True), cap)

    # Last resort: minimal tiles.
    return Np, Dp, 128, 128, 128, _vmem_limit(ws(128, 128, 128, True), cap)


def _pad2(x, Np, Dp):
    N, D = x.shape
    if Np == N and Dp == D:
        return x
    return jnp.pad(x, ((0, Np - N), (0, Dp - D)))


# --------------------------------------------------------------------------- #
# Pallas wrapper: k_xa = x @ a.T
# --------------------------------------------------------------------------- #
@functools.partial(
    jax.jit, static_argnames=("tm", "tn", "tk", "out_dtype", "vmem_limit"))
def _kernel_matmul(x, a, *, tm, tn, tk, out_dtype, vmem_limit):
    Np, Dp = x.shape
    gm, gn = Np // tm, Np // tn

    if tk == Dp:
        # Collapsed reduction axis: pure (i, j) matmul grid, both parallel.
        # The x block index (i, 0) is constant over j, so the x tile is
        # re-used across the whole j sweep without re-DMA.
        kern = _matmul_kernel
        grid = (gm, gn)
        in_specs = [pl.BlockSpec((tm, Dp), lambda i, j: (i, 0)),
                    pl.BlockSpec((tn, Dp), lambda i, j: (j, 0))]
        out_specs = pl.BlockSpec((tm, tn), lambda i, j: (i, j))
        scratch = []
        dims = ("parallel", "parallel")
    else:
        gk = Dp // tk
        kern = _matmul_acc_kernel
        grid = (gm, gn, gk)
        in_specs = [pl.BlockSpec((tm, tk), lambda i, j, k: (i, k)),
                    pl.BlockSpec((tn, tk), lambda i, j, k: (j, k))]
        out_specs = pl.BlockSpec((tm, tn), lambda i, j, k: (i, j))
        scratch = [pltpu.VMEM((tm, tn), jnp.float32)]
        dims = ("parallel", "parallel", "arbitrary")

    return pl.pallas_call(
        kern,
        out_shape=jax.ShapeDtypeStruct((Np, Np), out_dtype),
        grid_spec=pltpu.PrefetchScalarGridSpec(
            num_scalar_prefetch=0,
            grid=grid,
            in_specs=in_specs,
            out_specs=out_specs,
            scratch_shapes=scratch,
        ),
        compiler_params=pltpu.CompilerParams(
            dimension_semantics=dims,
            vmem_limit_bytes=vmem_limit,
        ),
    )(x, a)


# --------------------------------------------------------------------------- #
# DKLIEP forward
# --------------------------------------------------------------------------- #
def dkliep_forward(x, a, reduction="mean", compute_kernel_values=True):
    """DKLIEP forward (default parameterization, 2-D contexts)."""
    if a.ndim == 3:
        # TODO(synk): 3-D (N, r, D) context path (batched per-row matmul) is
        # not exercised by the default constructor and is not implemented.
        raise NotImplementedError("3-D (N, r, D) contexts are not implemented.")
    N, D = x.shape
    assert a.shape == (N, D), "Input tensors must have the same shape"
    if reduction not in ("mean", "none"):
        raise ValueError("Reduction must be 'mean' or 'none'.")

    out_dtype = jnp.promote_types(x.dtype, a.dtype)
    if x.dtype != out_dtype:
        x = x.astype(out_dtype)
    if a.dtype != out_dtype:
        a = a.astype(out_dtype)

    # Mean hoisted out of the kernel:
    #   mean(x @ a.T) == <sum_i x_i, sum_j a_j> / N^2   (O(N*D) instead of N^2)
    mean_val = None
    if reduction == "mean":
        mean_val = (jnp.dot(jnp.sum(x, axis=0, dtype=jnp.float32),
                            jnp.sum(a, axis=0, dtype=jnp.float32))
                    / jnp.float32(N * N)).astype(out_dtype)
        if not compute_kernel_values:
            # Analytic fast path: skip the N x N materialization entirely.
            return mean_val, {"dkliep_loss": mean_val, "kernel_values": None}

    itemsize = jnp.dtype(out_dtype).itemsize
    Np, Dp, tm, tn, tk, vmem_limit = _plan(N, D, itemsize, itemsize)

    # TODO(synk): on v5e, optionally cast f32 inputs to bf16 before the matmul
    # (keeping the f32 accumulator) to trade a little precision for MXU rate.
    xp = _pad2(x, Np, Dp)
    ap = _pad2(a, Np, Dp)
    k_pad = _kernel_matmul(xp, ap, tm=tm, tn=tn, tk=tk,
                           out_dtype=out_dtype, vmem_limit=vmem_limit)
    k_xa = k_pad if Np == N else k_pad[:N, :N]

    dkliep_loss = mean_val if reduction == "mean" else k_xa
    loss_dict = {"dkliep_loss": dkliep_loss, "kernel_values": k_xa}
    return dkliep_loss, loss_dict

# TODO(synk): optional x_proj / a_proj MLPs and the 'inner_product' / 'squared'
# exp_parameterization branches are disabled by the default constructor and are
# not implemented here.


# --------------------------------------------------------------------------- #
# Self-test
# --------------------------------------------------------------------------- #
if __name__ == "__main__":
    key = jax.random.PRNGKey(0)
    kx, ka = jax.random.split(key)

    # Small embedding shapes consistent with the forward signature: x, a (N, D).
    N, D = 128, 32
    x = jax.random.normal(kx, (N, D), dtype=jnp.float32)
    a = jax.random.normal(ka, (N, D), dtype=jnp.float32)

    loss, loss_dict = dkliep_forward(x, a, reduction="mean")
    jax.block_until_ready(loss)
    jax.block_until_ready(loss_dict["kernel_values"])

    # Pure-JAX reference.
    k_ref = jnp.dot(x, a.T, precision=jax.lax.Precision.HIGHEST)
    ref_loss = jnp.mean(k_ref)
    assert jnp.allclose(loss, ref_loss, atol=1e-3, rtol=1e-3), (loss, ref_loss)
    assert jnp.allclose(loss_dict["kernel_values"], k_ref, atol=1e-3, rtol=1e-3)

    # 'none' reduction returns the full kernel matrix.
    none_loss, _ = dkliep_forward(x, a, reduction="none")
    jax.block_until_ready(none_loss)
    assert jnp.allclose(none_loss, k_ref, atol=1e-3, rtol=1e-3)

    # bf16 inputs -> bf16 kernel_values (halved writeback, f32 accumulation).
    xb, ab = x.astype(jnp.bfloat16), a.astype(jnp.bfloat16)
    b_loss, b_dict = dkliep_forward(xb, ab, reduction="mean")
    jax.block_until_ready(b_loss)
    assert b_dict["kernel_values"].dtype == jnp.bfloat16
    ref_bf = jnp.dot(xb.astype(jnp.float32), ab.astype(jnp.float32).T,
                     precision=jax.lax.Precision.HIGHEST)
    assert jnp.allclose(b_dict["kernel_values"].astype(jnp.float32), ref_bf,
                        atol=2e-1, rtol=5e-2)

    # Exercise the multi-tile collapsed-k path and the k-split accumulator path
    # directly with small forced tiles.
    N2, D2 = 256, 256
    x2 = jax.random.normal(kx, (N2, D2), dtype=jnp.float32)
    a2 = jax.random.normal(ka, (N2, D2), dtype=jnp.float32)
    ref2 = jnp.dot(x2, a2.T, precision=jax.lax.Precision.HIGHEST)
    out_tkD = _kernel_matmul(x2, a2, tm=128, tn=128, tk=256,
                             out_dtype=jnp.dtype(jnp.float32),
                             vmem_limit=32 << 20)
    jax.block_until_ready(out_tkD)
    assert jnp.allclose(out_tkD, ref2, atol=1e-2, rtol=1e-3)
    out_ksplit = _kernel_matmul(x2, a2, tm=128, tn=128, tk=128,
                                out_dtype=jnp.dtype(jnp.float32),
                                vmem_limit=32 << 20)
    jax.block_until_ready(out_ksplit)
    assert jnp.allclose(out_ksplit, ref2, atol=1e-2, rtol=1e-3)

    # Analytic fast path (no N x N materialization).
    fast_loss, fast_dict = dkliep_forward(x, a, reduction="mean",
                                          compute_kernel_values=False)
    jax.block_until_ready(fast_loss)
    assert fast_dict["kernel_values"] is None
    assert jnp.allclose(fast_loss, ref_loss, atol=1e-3, rtol=1e-3)

    print("KERNEL_OK")
</pallas_src>

<mosaic_0001>
module attributes {stable_mosaic.version = 11 : i64} {
  func.func @_matmul_kernel(%arg0: i32, %arg1: i32, %arg2: memref<128x32xf32, #tpu.memory_space<vmem>>, %arg3: memref<128x32xf32, #tpu.memory_space<vmem>>, %arg4: memref<128x128xf32, #tpu.memory_space<vmem>>) attributes {dimension_semantics = [#tpu.dimension_semantics<parallel>, #tpu.dimension_semantics<parallel>], iteration_bounds = array<i64: 1, 1>, scalar_prefetch = 0 : i64, scratch_operands = 0 : i64, tpu.core_type = #tpu.core_type<tc>, window_params = [{transform_indices = @transform_0, window_bounds = array<i64: 128, 32>}, {transform_indices = @transform_1, window_bounds = array<i64: 128, 32>}, {transform_indices = @transform_2, window_bounds = array<i64: 128, 128>}]} {
    %c0 = arith.constant 0 : index
    %c0_0 = arith.constant 0 : index
    %0 = vector.load %arg2[%c0, %c0_0] : memref<128x32xf32, #tpu.memory_space<vmem>>, vector<128x32xf32>
    %c0_1 = arith.constant 0 : index
    %c0_2 = arith.constant 0 : index
    %1 = vector.load %arg3[%c0_1, %c0_2] : memref<128x32xf32, #tpu.memory_space<vmem>>, vector<128x32xf32>
    %cst = arith.constant dense<0.000000e+00> : vector<128x128xf32>
    %2 = tpu.matmul %0, %1, %cst {dimension_numbers = #tpu.dot_dimension_numbers<[1], [1], [0], [0], [0, 0, 1, 0], [], []>} : vector<128x32xf32>, vector<128x32xf32>, vector<128x128xf32> -> vector<128x128xf32>
    %c0_3 = arith.constant 0 : index
    %c0_4 = arith.constant 0 : index
    %3 = vector.load %arg4[%c0_3, %c0_4] : memref<128x128xf32, #tpu.memory_space<vmem>>, vector<128x128xf32>
    tpu.vector_store %arg4[%c0_3, %c0_4], %2 {strides = array<i32>} : memref<128x128xf32, #tpu.memory_space<vmem>>, vector<128x128xf32>,
    return
  }
  func.func @transform_0(%arg0: i32, %arg1: i32) -> (i32, i32) {
    %c0_i32 = arith.constant 0 : i32
    %c0_i32_0 = arith.constant 0 : i32
    return %arg0, %c0_i32 : i32, i32
  }
  func.func @transform_1(%arg0: i32, %arg1: i32) -> (i32, i32) {
    %c0_i32 = arith.constant 0 : i32
    %c0_i32_0 = arith.constant 0 : i32
    return %arg1, %c0_i32 : i32, i32
  }
  func.func @transform_2(%arg0: i32, %arg1: i32) -> (i32, i32) {
    %c0_i32 = arith.constant 0 : i32
    return %arg0, %arg1 : i32, i32
  }
}

</mosaic_0001>

<bundles_post_ra>
// kernel: _kernel_matmul.1
= control target key start
LH: loop header
LB: loop body
LE: loop exit
PB: predicated region body
PF: predicated region fallthrough
CT: control target
= control target key end

     0   :  { %vm44_vm0 = vcmask 261120   ;;  %s741_s0 = inlined_call_operand.vmem [shape: f32[128,32], index: 0, kind: input, shape index: {}]   ;;  %s742_s1 = inlined_call_operand.vmem [shape: f32[128,32], index: 1, kind: input, shape index: {}]   ;;  %s743_s2 = inlined_call_operand.hbm [shape: f32[128,128], index: 2, kind: output, shape index: {}]  }
   0x1   :  { %v28_v0 = vld [vmem:[%s742_s1] sm:$0xff]  ;;  %v29_v1 = vld [vmem:[%s742_s1 + $0x8] sm:$0xff]  ;;  %v30_v2 = vld [vmem:[%s742_s1 + $0x10] sm:$0xff] }
   0x2   :  { %v438_v3 = vpack.c.bf16 %v29_v1, %v28_v0  ;;  %vm558_vm1 = vmpackc.low %vm44_vm0, %vm44_vm0  ;;  %v31_v5 = vld [vmem:[%s742_s1 + $0x18] sm:$0xff]  ;;  %v12_v7 = vld [vmem:[%s741_s0] sm:$0xff] }
   0x3   :  { %v444_v6 = vpack.c.bf16 %v31_v5, %v30_v2  ;;  %v32_v8 = vld [vmem:[%s742_s1 + $0x20] sm:$0xff]  ;;  %v33_v9 = vld [vmem:[%s742_s1 + $0x28] sm:$0xff]  ;;  %414 = vmatprep.mubr.msk.f32.mxu0 %vm44_vm0, %v12_v7 }
   0x4   :  { %440 = vmatprep.subr.msk.bf16.mxu0 %vm558_vm1, %v438_v3  ;;  %486 = vmatprep.subr.msk.bf16.mxu1 %vm558_vm1, %v438_v3  ;;  %v20_v10 = vld [vmem:[%s741_s0 + $0x40] sm:$0xff]  ;;  %v450_v11 = vpack.c.bf16 %v33_v9, %v32_v8 }
   0x5   :  { %443 = vmatpush3.bf16.xpose.msk.msra.mxu0 %vm558_vm1, %v438_v3  ;;  %494 = vmatpush3.bf16.xpose.msk.msra.mxu1 %vm558_vm1, %v438_v3 }
   0x6   :  { %446 = vmatprep.subr.msk.bf16.mxu0 %vm558_vm1, %v444_v6  ;;  %487 = vmatprep.subr.msk.bf16.mxu1 %vm558_vm1, %v444_v6 }
   0x7   :  { %426 = vmatprep.mubr.msk.f32.mxu1 %vm44_vm0, %v20_v10 }
   0x8   :  { %7 = vsyncpa [#allocation3], 0  ;;  %v34_v12 = vld [vmem:[%s742_s1 + $0x30] sm:$0xff]  ;;  %v35_v13 = vld [vmem:[%s742_s1 + $0x38] sm:$0xff] }
   0x9   :  { %v456_v14 = vpack.c.bf16 %v35_v13, %v34_v12  ;;  %v36_v15 = vld [vmem:[%s742_s1 + $0x40] sm:$0xff]  ;;  %v37_v16 = vld [vmem:[%s742_s1 + $0x48] sm:$0xff]  ;;  %v38_v18 = vld [vmem:[%s742_s1 + $0x50] sm:$0xff] }
   0xa   :  { %v462_v17 = vpack.c.bf16 %v37_v16, %v36_v15  ;;  %v39_v19 = vld [vmem:[%s742_s1 + $0x58] sm:$0xff]  ;;  %v40_v21 = vld [vmem:[%s742_s1 + $0x60] sm:$0xff]  ;;  %v41_v22 = vld [vmem:[%s742_s1 + $0x68] sm:$0xff] }
   0xb   :  { %v468_v20 = vpack.c.bf16 %v39_v19, %v38_v18  ;;  %v474_v23 = vpack.c.bf16 %v41_v22, %v40_v21  ;;  %v42_v24 = vld [vmem:[%s742_s1 + $0x70] sm:$0xff]  ;;  %v43_v25 = vld [vmem:[%s742_s1 + $0x78] sm:$0xff]  ;;  %v13_v27 = vld [vmem:[%s741_s0 + $0x8] sm:$0xff] }
   0xc   :  { %v480_v26 = vpack.c.bf16 %v43_v25, %v42_v24  ;;  %v21_v28 = vld [vmem:[%s741_s0 + $0x48] sm:$0xff]  ;;  %v14_v29 = vld [vmem:[%s741_s0 + $0x10] sm:$0xff]  ;;  %v15_v31 = vld [vmem:[%s741_s0 + $0x18] sm:$0xff] }
   0xd   :  { %449 = vmatpush3.bf16.xpose.msk.msra.mxu0 %vm558_vm1, %v444_v6  ;;  %495 = vmatpush3.bf16.xpose.msk.msra.mxu1 %vm558_vm1, %v444_v6  ;;  %v22_v30 = vld [vmem:[%s741_s0 + $0x50] sm:$0xff]  ;;  %v23_v32 = vld [vmem:[%s741_s0 + $0x58] sm:$0xff]  ;;  %v16_v33 = vld [vmem:[%s741_s0 + $0x20] sm:$0xff] }
   0xe   :  { %452 = vmatprep.subr.msk.bf16.mxu0 %vm558_vm1, %v450_v11  ;;  %488 = vmatprep.subr.msk.bf16.mxu1 %vm558_vm1, %v450_v11  ;;  %v24_v34 = vld [vmem:[%s741_s0 + $0x60] sm:$0xff]  ;;  %v17_v35 = vld [vmem:[%s741_s0 + $0x28] sm:$0xff]  ;;  %v18_v37 = vld [vmem:[%s741_s0 + $0x30] sm:$0xff] }
   0xf   :  { %v25_v36 = vld [vmem:[%s741_s0 + $0x68] sm:$0xff]  ;;  %v26_v38 = vld [vmem:[%s741_s0 + $0x70] sm:$0xff]  ;;  %v19_v39 = vld [vmem:[%s741_s0 + $0x38] sm:$0xff] }
  0x10   :  { %v27_v40 = vld [vmem:[%s741_s0 + $0x78] sm:$0xff]  ;;  %s529_s0 = smov [#allocation2]  }
  0x11   :  { %s307_s16 = sshll.u32 %s529_s0, 4  ;;  %s308_s16 = int_to_ptr.vmem [resolvable:$true] %s307_s16 }
  0x12   :  { %s505_s1 = scalar_lea.vmem %s308_s16, 2048  ;;  %p510_p1 = scmp.lt.s32.totalorder %s308_s16, %s308_s16 }
  0x13   :  { %p506_p0 = scmp.ne.s32.totalorder %s308_s16, %s505_s1  ;;  %p511_p2 = scmp.lt.s32.totalorder %s505_s1, %s505_s1 }
  0x15   :  { %455 = vmatpush3.bf16.xpose.msk.msra.mxu0 %vm558_vm1, %v450_v11  ;;  %496 = vmatpush3.bf16.xpose.msk.msra.mxu1 %vm558_vm1, %v450_v11  ;;  %p512_p3 = por %p511_p2, %p510_p1 }
  0x16   :  { %458 = vmatprep.subr.msk.bf16.mxu0 %vm558_vm1, %v456_v14  ;;  %489 = vmatprep.subr.msk.bf16.mxu1 %vm558_vm1, %v456_v14 }
  0x17   :  { %p513_p4 = pnand %p512_p3, %p506_p0 }
  0x1d   :  { %461 = vmatpush3.bf16.xpose.msk.msra.mxu0 %vm558_vm1, %v456_v14  ;;  %497 = vmatpush3.bf16.xpose.msk.msra.mxu1 %vm558_vm1, %v456_v14 }
  0x1e   :  { %464 = vmatprep.subr.msk.bf16.mxu0 %vm558_vm1, %v462_v17  ;;  %490 = vmatprep.subr.msk.bf16.mxu1 %vm558_vm1, %v462_v17 }
  0x25   :  { %467 = vmatpush3.bf16.xpose.msk.msra.mxu0 %vm558_vm1, %v462_v17  ;;  %498 = vmatpush3.bf16.xpose.msk.msra.mxu1 %vm558_vm1, %v462_v17 }
  0x26   :  { %470 = vmatprep.subr.msk.bf16.mxu0 %vm558_vm1, %v468_v20  ;;  %491 = vmatprep.subr.msk.bf16.mxu1 %vm558_vm1, %v468_v20 }
  0x2d   :  { %473 = vmatpush3.bf16.xpose.msk.msra.mxu0 %vm558_vm1, %v468_v20  ;;  %499 = vmatpush3.bf16.xpose.msk.msra.mxu1 %vm558_vm1, %v468_v20 }
  0x2e   :  { %476 = vmatprep.subr.msk.bf16.mxu0 %vm558_vm1, %v474_v23  ;;  %492 = vmatprep.subr.msk.bf16.mxu1 %vm558_vm1, %v474_v23 }
  0x35   :  { %479 = vmatpush3.bf16.xpose.msk.msra.mxu0 %vm558_vm1, %v474_v23  ;;  %500 = vmatpush3.bf16.xpose.msk.msra.mxu1 %vm558_vm1, %v474_v23 }
  0x36   :  { %482 = vmatprep.subr.msk.bf16.mxu0 %vm558_vm1, %v480_v26  ;;  %493 = vmatprep.subr.msk.bf16.mxu1 %vm558_vm1, %v480_v26 }
  0x3d   :  { %485 = vmatpush3.bf16.xpose.msk.msra.mxu0 %vm558_vm1, %v480_v26  ;;  %501 = vmatpush3.bf16.xpose.msk.msra.mxu1 %vm558_vm1, %v480_v26 }
  0x44   :  { %415 = vmatmul.mubr.msk.f32.vlgmr.msra.gmra.mrb[0].mxu0 %vm44_vm0, %v13_v27  ;;  %427 = vmatmul.mubr.msk.f32.vlgmr.msra.gmra.mrb[0].mxu1 %vm44_vm0, %v21_v28 }
  0x45   :  { %417 = vmatprep.mubr.msk.f32.mxu0 %vm44_vm0, %v14_v29  ;;  %429 = vmatprep.mubr.msk.f32.mxu1 %vm44_vm0, %v22_v30 }
  0x48   :  { %418 = vmatmul.mubr.msk.f32.gmra.mrb[2].mxu0 %vm44_vm0, %v15_v31  ;;  %430 = vmatmul.mubr.msk.f32.gmra.mrb[2].mxu1 %vm44_vm0, %v23_v32 }
  0x49   :  { %420 = vmatprep.mubr.msk.f32.mxu0 %vm44_vm0, %v16_v33  ;;  %432 = vmatprep.mubr.msk.f32.mxu1 %vm44_vm0, %v24_v34 }
  0x4c   :  { %421 = vmatmul.mubr.msk.f32.gmra.mrb[4].mxu0 %vm44_vm0, %v17_v35  ;;  %433 = vmatmul.mubr.msk.f32.gmra.mrb[4].mxu1 %vm44_vm0, %v25_v36 }
  0x4d   :  { %423 = vmatprep.mubr.msk.f32.mxu0 %vm44_vm0, %v18_v37  ;;  %435 = vmatprep.mubr.msk.f32.mxu1 %vm44_vm0, %v26_v38 }
  0x50   :  { %424 = vmatmul.mubr.msk.f32.gmra.mrb[6].mxu0 %vm44_vm0, %v19_v39  ;;  %436 = vmatmul.mubr.msk.f32.gmra.mrb[6].mxu1 %vm44_vm0, %v27_v40 }
 0x117   :  { %v416_v41 = vpop.f32.mrb[0].mxu0  ;;  %v428_v42 = vpop.f32.mrb[0].mxu1 }
 0x118   :  { %287 = vst [vmem:[#allocation2 + $0x8] sm:$0xff] %v416_v41  ;;  %295 = vst [vmem:[#allocation2 + $0x48] sm:$0xff] %v428_v42  ;;  %v207_v43 = vpop.f32.mrb[1].mxu0  ;;  %v247_v44 = vpop.f32.mrb[1].mxu1 }
 0x119   :  { %286 = vst [vmem:[#allocation2] sm:$0xff] %v207_v43  ;;  %294 = vst [vmem:[#allocation2 + $0x40] sm:$0xff] %v247_v44 }
 0x11b   :  { %v419_v45 = vpop.f32.mrb[2].mxu0  ;;  %v431_v46 = vpop.f32.mrb[2].mxu1 }
 0x11c   :  { %289 = vst [vmem:[#allocation2 + $0x18] sm:$0xff] %v419_v45  ;;  %297 = vst [vmem:[#allocation2 + $0x58] sm:$0xff] %v431_v46  ;;  %v217_v47 = vpop.f32.mrb[3].mxu0  ;;  %v257_v48 = vpop.f32.mrb[3].mxu1 }
 0x11d   :  { %288 = vst [vmem:[#allocation2 + $0x10] sm:$0xff] %v217_v47  ;;  %296 = vst [vmem:[#allocation2 + $0x50] sm:$0xff] %v257_v48 }
 0x11f   :  { %v422_v49 = vpop.f32.mrb[4].mxu0  ;;  %v434_v50 = vpop.f32.mrb[4].mxu1 }
 0x120   :  { %291 = vst [vmem:[#allocation2 + $0x28] sm:$0xff] %v422_v49  ;;  %299 = vst [vmem:[#allocation2 + $0x68] sm:$0xff] %v434_v50  ;;  %v227_v51 = vpop.f32.mrb[5].mxu0  ;;  %v267_v52 = vpop.f32.mrb[5].mxu1 }
 0x121   :  { %290 = vst [vmem:[#allocation2 + $0x20] sm:$0xff] %v227_v51  ;;  %298 = vst [vmem:[#allocation2 + $0x60] sm:$0xff] %v267_v52 }
 0x123   :  { %v425_v53 = vpop.f32.mrb[6].mxu0  ;;  %v437_v54 = vpop.f32.mrb[6].mxu1 }
 0x124   :  { %293 = vst [vmem:[#allocation2 + $0x38] sm:$0xff] %v425_v53  ;;  %301 = vst [vmem:[#allocation2 + $0x78] sm:$0xff] %v437_v54  ;;  %v237_v55 = vpop.f32.mrb[7].mxu0  ;;  %v277_v56 = vpop.f32.mrb[7].mxu1 }
 0x125   :  { %292 = vst [vmem:[#allocation2 + $0x30] sm:$0xff] %v237_v55  ;;  %300 = vst [vmem:[#allocation2 + $0x70] sm:$0xff] %v277_v56 }
 0x126   :  { %516 = shalt.err (!%p513_p4)
}
 0x127   :  { %s517_s19 = scalar_lea.hbm %s743_s2, 2048 }
 0x128   :  { %p518_p5 = scmp.ne.s32.totalorder %s743_s2, %s517_s19  ;;  %p521_p6 = scmp.lt.u32.totalorder %s517_s19, %s743_s2 }
 0x12a   :  { %p523_p7 = pnand %p521_p6, %p518_p5 }
 0x12c   :  { %526 = shalt.err (!%p523_p7)
}
 0x12d   :  { %s530_s24 = smov 128   ;;  %s531_s25 = smov 8  }
 0x12e   :  { %313 = dma.vmem_to_hbm [thread:$0]  %s308_s16, 2048, %s743_s2, [#allocation3], %s530_s24, %s530_s24, %s531_s25  }
 0x12f   :  { %527 = dma.done.wait [#allocation3], 2048  }
 0x130   :  { %528 = vsyncadd [#allocation3], 4294965248 }
 0x131   :  { %317 = vsyncpa [#allocation3], 1 }

</bundles_post_ra>
